<compile_context>
chip_gen: v6e
topology: v6e:2x2x1
jax: 0.10.0
libtpu: 0.0.40
codegen_flags: <defaults>
</compile_context>

<pallas_src>
import jax
import jax.numpy as jnp
from jax.experimental import pallas as pl
from jax.experimental.pallas import tpu as pltpu

_LANES = 128


def _lowbias32(x):
    """Good 32-bit integer mixing hash (lowbias32), elementwise on uint32."""
    x = x ^ (x >> 16)
    x = x * jnp.uint32(0x7FEB352D)
    x = x ^ (x >> 15)
    x = x * jnp.uint32(0x846CA68B)
    x = x ^ (x >> 16)
    return x


def _latent_kernel(seed_ref, z_ref):
    """Fill a (block_rows, 128) tile with standard-normal samples.

    seed_ref : SMEM scalar-prefetch ref, shape (1,), int32
    z_ref    : VMEM output tile, (block_rows, 128), float32
    """
    block_rows, lanes = z_ref.shape

    # Global flat element index (counter) for every lane of the tile.
    row = jax.lax.broadcasted_iota(jnp.int32, (block_rows, lanes), 0)
    col = jax.lax.broadcasted_iota(jnp.int32, (block_rows, lanes), 1)
    flat = (pl.program_id(0) * block_rows + row) * lanes + col
    idx = flat.astype(jnp.uint32)

    # Mix the user seed with a large odd constant (avoids consecutive-seed
    # stream reuse across calls), then hash (seed, counter) per element.
    seed_u = seed_ref[0].astype(jnp.uint32) * jnp.uint32(0x9E3779B9)
    h1 = _lowbias32(idx ^ seed_u)
    h2 = _lowbias32(h1 ^ jnp.uint32(0xA511E9B3))

    # Two uniforms in (0, 1): 23 high bits + 0.5, scaled by 2^-23.
    scale = jnp.float32(1.0 / (1 << 23))
    u1 = ((h1 >> 9).astype(jnp.float32) + jnp.float32(0.5)) * scale
    u2 = ((h2 >> 9).astype(jnp.float32) + jnp.float32(0.5)) * scale

    # Box-Muller: z = sqrt(-2 ln u1) * cos(2 pi u2)   (log/sqrt/cos -> EUP)
    r = jnp.sqrt(jnp.float32(-2.0) * jnp.log(u1))
    theta = jnp.float32(2.0 * 3.14159265358979) * u2
    z_ref[...] = r * jnp.cos(theta)


def _round_up(x: int, m: int) -> int:
    return ((x + m - 1) // m) * m


def sample_latents(n: int, dim_latent: int, seed: jax.Array,
                   *, max_block_rows: int = 1024) -> jax.Array:
    """Returns z ~ N(0, 1) of shape (n, dim_latent), float32."""
    total = n * dim_latent

    # Lane-dense slab: (rows, 128), rows padded to a multiple of the block.
    rows = pl.cdiv(total, _LANES)
    rows8 = _round_up(rows, 8)                      # sublane alignment
    block_rows = min(max_block_rows, rows8)
    rows_padded = _round_up(rows8, block_rows)
    grid = (rows_padded // block_rows,)

    slab = pl.pallas_call(
        _latent_kernel,
        out_shape=jax.ShapeDtypeStruct((rows_padded, _LANES), jnp.float32),
        grid_spec=pltpu.PrefetchScalarGridSpec(
            num_scalar_prefetch=1,                  # seed lands in SMEM
            grid=grid,
            in_specs=[],                            # no tensor inputs
            out_specs=pl.BlockSpec(
                (block_rows, _LANES),
                lambda i, seed_ref: (i, 0),         # prefetch ref is positional
            ),
        ),
        compiler_params=pltpu.CompilerParams(
            dimension_semantics=("parallel",),      # independent blocks (v7x)
        ),
    )(seed)

    return slab.reshape(-1)[:total].reshape(n, dim_latent)


class Generator:
    """JAX mirror of the PyTorch base class API."""

    def __init__(self, dim_latent: int):
        self.dim_latent = dim_latent

    def __call__(self, n: int, seed: jax.Array):
        # Base-class forward is abstract; expose the latent-sampling kernel,
        # the only compute the base class' state (dim_latent) implies.
        return sample_latents(n, self.dim_latent, seed)


if __name__ == "__main__":
    # Deterministic setup from PRNGKey(0).
    key = jax.random.PRNGKey(0)
    seed = jax.random.randint(key, (1,), 0, 2**31 - 1, dtype=jnp.int32)

    n = 16
    dim_latent = 32
    gen = Generator(dim_latent)

    z = gen(n, seed)
    z = jax.block_until_ready(z)

    assert z.shape == (n, dim_latent), z.shape
    assert z.dtype == jnp.float32, z.dtype
    assert bool(jnp.all(jnp.isfinite(z))), "non-finite latents"
    # Loose sanity check that the samples look standard-normal-ish.
    assert float(jnp.abs(jnp.mean(z))) < 0.3, float(jnp.mean(z))
    assert 0.7 < float(jnp.std(z)) < 1.3, float(jnp.std(z))

    print("KERNEL_OK")
</pallas_src>

<mosaic_0001>
module attributes {stable_mosaic.version = 11 : i64} {
  func.func @_latent_kernel(%arg0: i32, %arg1: memref<1xi32, #tpu.memory_space<smem>>, %arg2: memref<8x128xf32, #tpu.memory_space<vmem>>) attributes {dimension_semantics = [#tpu.dimension_semantics<parallel>], iteration_bounds = array<i64: 1>, scalar_prefetch = 1 : i64, scratch_operands = 0 : i64, tpu.core_type = #tpu.core_type<tc>, window_params = [{transform_indices = @transform_0, window_bounds = array<i64: 8, 128>}]} {
    %0 = tpu.iota {dimensions = array<i32: 0>} : vector<8x128xi32>
    %1 = tpu.iota {dimensions = array<i32: 1>} : vector<8x128xi32>
    %c8_i32 = arith.constant 8 : i32
    %2 = arith.muli %arg0, %c8_i32 : i32
    %3 = vector.broadcast %2 : i32 to vector<8x128xi32>
    %4 = arith.addi %3, %0 : vector<8x128xi32>
    %c128_i32 = arith.constant 128 : i32
    %5 = vector.broadcast %c128_i32 : i32 to vector<8x128xi32>
    %6 = arith.muli %4, %5 : vector<8x128xi32>
    %7 = arith.addi %6, %1 : vector<8x128xi32>
    %c0 = arith.constant 0 : index
    %8 = memref.load %arg1[%c0] : memref<1xi32, #tpu.memory_space<smem>>
    %c-1640531527_i32 = arith.constant -1640531527 : i32
    %9 = arith.muli %8, %c-1640531527_i32 : i32
    %10 = vector.broadcast %9 : i32 to vector<8x128xi32>
    %11 = arith.xori %7, %10 : vector<8x128xi32>
    %c16_i32 = arith.constant 16 : i32
    %12 = vector.broadcast %c16_i32 : i32 to vector<8x128xi32>
    %13 = arith.shrui %11, %12 : vector<8x128xi32>
    %14 = arith.xori %11, %13 : vector<8x128xi32>
    %c2146121005_i32 = arith.constant 2146121005 : i32
    %15 = vector.broadcast %c2146121005_i32 : i32 to vector<8x128xi32>
    %16 = arith.muli %14, %15 : vector<8x128xi32>
    %c15_i32 = arith.constant 15 : i32
    %17 = vector.broadcast %c15_i32 : i32 to vector<8x128xi32>
    %18 = arith.shrui %16, %17 : vector<8x128xi32>
    %19 = arith.xori %16, %18 : vector<8x128xi32>
    %c-2073254261_i32 = arith.constant -2073254261 : i32
    %20 = vector.broadcast %c-2073254261_i32 : i32 to vector<8x128xi32>
    %21 = arith.muli %19, %20 : vector<8x128xi32>
    %c16_i32_0 = arith.constant 16 : i32
    %22 = vector.broadcast %c16_i32_0 : i32 to vector<8x128xi32>
    %23 = arith.shrui %21, %22 : vector<8x128xi32>
    %24 = arith.xori %21, %23 : vector<8x128xi32>
    %c-1525552717_i32 = arith.constant -1525552717 : i32
    %25 = vector.broadcast %c-1525552717_i32 : i32 to vector<8x128xi32>
    %26 = arith.xori %24, %25 : vector<8x128xi32>
    %c16_i32_1 = arith.constant 16 : i32
    %27 = vector.broadcast %c16_i32_1 : i32 to vector<8x128xi32>
    %28 = arith.shrui %26, %27 : vector<8x128xi32>
    %29 = arith.xori %26, %28 : vector<8x128xi32>
    %c2146121005_i32_2 = arith.constant 2146121005 : i32
    %30 = vector.broadcast %c2146121005_i32_2 : i32 to vector<8x128xi32>
    %31 = arith.muli %29, %30 : vector<8x128xi32>
    %c15_i32_3 = arith.constant 15 : i32
    %32 = vector.broadcast %c15_i32_3 : i32 to vector<8x128xi32>
    %33 = arith.shrui %31, %32 : vector<8x128xi32>
    %34 = arith.xori %31, %33 : vector<8x128xi32>
    %c-2073254261_i32_4 = arith.constant -2073254261 : i32
    %35 = vector.broadcast %c-2073254261_i32_4 : i32 to vector<8x128xi32>
    %36 = arith.muli %34, %35 : vector<8x128xi32>
    %c16_i32_5 = arith.constant 16 : i32
    %37 = vector.broadcast %c16_i32_5 : i32 to vector<8x128xi32>
    %38 = arith.shrui %36, %37 : vector<8x128xi32>
    %39 = arith.xori %36, %38 : vector<8x128xi32>
    %c9_i32 = arith.constant 9 : i32
    %40 = vector.broadcast %c9_i32 : i32 to vector<8x128xi32>
    %41 = arith.shrui %24, %40 : vector<8x128xi32>
    %42 = arith.uitofp %41 : vector<8x128xi32> to vector<8x128xf32>
    %cst = arith.constant 5.000000e-01 : f32
    %43 = vector.broadcast %cst : f32 to vector<8x128xf32>
    %44 = arith.addf %42, %43 : vector<8x128xf32>
    %cst_6 = arith.constant 1.1920929E-7 : f32
    %45 = vector.broadcast %cst_6 : f32 to vector<8x128xf32>
    %46 = arith.mulf %44, %45 : vector<8x128xf32>
    %c9_i32_7 = arith.constant 9 : i32
    %47 = vector.broadcast %c9_i32_7 : i32 to vector<8x128xi32>
    %48 = arith.shrui %39, %47 : vector<8x128xi32>
    %49 = arith.uitofp %48 : vector<8x128xi32> to vector<8x128xf32>
    %cst_8 = arith.constant 5.000000e-01 : f32
    %50 = vector.broadcast %cst_8 : f32 to vector<8x128xf32>
    %51 = arith.addf %49, %50 : vector<8x128xf32>
    %cst_9 = arith.constant 1.1920929E-7 : f32
    %52 = vector.broadcast %cst_9 : f32 to vector<8x128xf32>
    %53 = arith.mulf %51, %52 : vector<8x128xf32>
    %54 = math.log %46 : vector<8x128xf32>
    %cst_10 = arith.constant -2.000000e+00 : f32
    %55 = vector.broadcast %cst_10 : f32 to vector<8x128xf32>
    %56 = arith.mulf %55, %54 : vector<8x128xf32>
    %57 = math.sqrt %56 : vector<8x128xf32>
    %cst_11 = arith.constant 6.28318548 : f32
    %58 = vector.broadcast %cst_11 : f32 to vector<8x128xf32>
    %59 = arith.mulf %58, %53 : vector<8x128xf32>
    %60 = math.cos %59 : vector<8x128xf32>
    %61 = arith.mulf %57, %60 : vector<8x128xf32>
    %c0_12 = arith.constant 0 : index
    %c0_13 = arith.constant 0 : index
    %62 = vector.load %arg2[%c0_12, %c0_13] : memref<8x128xf32, #tpu.memory_space<vmem>>, vector<8x128xf32>
    tpu.vector_store %arg2[%c0_12, %c0_13], %61 {strides = array<i32>} : memref<8x128xf32, #tpu.memory_space<vmem>>, vector<8x128xf32>,
    return
  }
  func.func @transform_0(%arg0: i32, %arg1: memref<1xi32, #tpu.memory_space<smem>>) -> (i32, i32) {
    %c0_i32 = arith.constant 0 : i32
    %c0_i32_0 = arith.constant 0 : i32
    return %arg0, %c0_i32 : i32, i32
  }
}

</mosaic_0001>

<bundles_post_ra>
// kernel: tpu_custom_call.1
= control target key start
LH: loop header
LB: loop body
LE: loop exit
PB: predicated region body
PF: predicated region fallthrough
CT: control target
= control target key end

     0   :  { %7 = vsyncpa [#allocation5], 0  ;;  %v8_v0 = vlaneseq  ;;  %v231_v48 = vmov 683565275   ;;  %v232_v50 = vmov 2475754826   ;;  %s275_s0 = inlined_call_operand.<no memory space> [shape: s32[1], index: 0, kind: input, shape index: {}]   ;;  %s276_s1 = inlined_call_operand.hbm [shape: f32[8,128], index: 1, kind: output, shape index: {}]  }
   0x1   :  { %s18_s8 = smul.u32 2654435769, %s275_s0  ;;  %v233_v53 = vmov 2131351028   ;;  %v234_v55 = vmov 2102212464  }
   0x2   :  { %v9_v1 = vshrl.u32 %v8_v0, 7  ;;  %v11_v2 = vand.u32 127, %v8_v0  ;;  %v235_v57 = vmov 920167782   ;;  %s237_s0 = smov [#allocation4]  }
   0x3   :  { %v19_v4 = vstv %s18_s8  ;;  %s178_s9 = sshll.u32 %s237_s0, 4  ;;  %s179_s9 = int_to_ptr.vmem [resolvable:$true] %s178_s9 }
   0x4   :  { %v15_v3 = vmul.u32 128, %v9_v1  ;;  %v236_v1 = vmov 1326507024   ;;  %s209_s10 = scalar_lea.vmem %s179_s9, 128  ;;  %p214_p1 = scmp.lt.s32.totalorder %s179_s9, %s179_s9 }
   0x5   :  { %p210_p0 = scmp.ne.s32.totalorder %s179_s9, %s209_s10  ;;  %p215_p2 = scmp.lt.s32.totalorder %s209_s10, %s209_s10 }
   0x6   :  { %v16_v5 = vadd.s32 %v15_v3, %v11_v2 }
   0x7   :  { %p216_p3 = por %p215_p2, %p214_p1 }
   0x8   :  { %v20_v6 = vxor.u32 %v19_v4, %v16_v5 }
   0x9   :  { %p217_p4 = pnand %p216_p3, %p210_p0 }
   0xa   :  { %v21_v7 = vshrl.u32 %v20_v6, 16 }
   0xc   :  { %v22_v8 = vxor.u32 %v21_v7, %v20_v6 }
   0xe   :  { %v23_v9 = vmul.u32 2146121005, %v22_v8 }
  0x10   :  { %v24_v10 = vshrl.u32 %v23_v9, 15 }
  0x12   :  { %v25_v11 = vxor.u32 %v24_v10, %v23_v9 }
  0x14   :  { %v26_v12 = vmul.u32 2221713035, %v25_v11 }
  0x16   :  { %v27_v13 = vshrl.u32 %v26_v12, 16 }
  0x18   :  { %v28_v14 = vxor.u32 %v27_v13, %v26_v12 }
  0x1a   :  { %v29_v15 = vxor.u32 2769414579, %v28_v14  ;;  %v38_v36 = vshrl.u32 %v28_v14, 9 }
  0x1c   :  { %v30_v16 = vshrl.u32 %v29_v15, 16  ;;  %v39_v40 = vshrl.u32 %v38_v36, 16  ;;  %v40_v41 = vand.u32 65535, %v38_v36 }
  0x1e   :  { %v31_v17 = vxor.u32 %v30_v16, %v29_v15  ;;  %v41_v46 = vcvt.s32.f32 %v39_v40  ;;  %v43_v52 = vcvt.s32.f32 %v40_v41 }
  0x20   :  { %v32_v18 = vmul.u32 2146121005, %v31_v17  ;;  %v42_v3 = vmul.f32 65536.0, %v41_v46 }
  0x22   :  { %v33_v19 = vshrl.u32 %v32_v18, 15 }
  0x24   :  { %v34_v20 = vxor.u32 %v33_v19, %v32_v18 }
  0x26   :  { %v35_v21 = vmul.u32 2221713035, %v34_v20 }
  0x28   :  { %v36_v22 = vshrl.u32 %v35_v21, 16 }
  0x2a   :  { %v37_v23 = vxor.u32 %v36_v22, %v35_v21 }
  0x2c   :  { %v47_v24 = vshrl.u32 %v37_v23, 9 }
  0x2e   :  { %v48_v25 = vshrl.u32 %v47_v24, 16  ;;  %v49_v26 = vand.u32 65535, %v47_v24 }
  0x30   :  { %v50_v27 = vcvt.s32.f32 %v48_v25  ;;  %v52_v28 = vcvt.s32.f32 %v49_v26  ;;  %v44_v26 = vadd.f32 %v43_v52, %v42_v3 }
  0x32   :  { %v51_v29 = vmul.f32 65536.0, %v50_v27 }
  0x34   :  { %v53_v30 = vadd.f32 %v52_v28, %v51_v29  ;;  %v45_v29 = vadd.f32 0.5, %v44_v26 }
  0x36   :  { %v54_v31 = vadd.f32 0.5, %v53_v30 }
  0x38   :  { %v55_v32 = vmul.f32 1.1920929e-07, %v54_v31 }
  0x3a   :  { %v251_v33 = vmul.f32 6.2831855, %v55_v32  ;;  %v46_v32 = vmul.f32 1.1920929e-07, %v45_v29 }
  0x3c   :  { %v70_v34 = vand.u32 2139095040, %v251_v33  ;;  %v67_v38 = vand.u32 2147483647, %v251_v33  ;;  %201 = vlog2.f32 %v46_v32  ;;  %vm69_vm7 = vcmp.lt.s32.totalorder %v251_v33, 0 }
  0x3d   :  { %vm159_vm14 = vweird.f32 %v251_v33 }
  0x3e   :  { %v71_v35 = vshrl.u32 %v70_v34, 23  ;;  %v74_v43 = vand.u32 8388607, %v67_v38  ;;  %vm68_vm8 = vcmp.le.f32.partialorder %v67_v38, 0.7853982 }
  0x40   :  { %v186_v37 = vadd.s32 4294967169, %v71_v35  ;;  %v75_v59 = vor.u32 8388608, %v74_v43 }
  0x42   :  { %v77_v39 = vadd.s32 1, %v186_v37  ;;  %v115_v11 = vshll.u32 %v75_v59, 8 }
  0x44   :  { %vm78_vm0 = vcmp.gt.s32.totalorder %v77_v39, 0 }
  0x45   :  { %v79_v42 = vsel %vm78_vm0, %v77_v39, 0 }
  0x46   :  { %v81_v44 = vand.u32 31, %v79_v42  ;;  %v80_v45 = vshrl.u32 %v79_v42, 5 }
  0x48   :  { %v82_v47 = vsub.s32 32, %v81_v44  ;;  %v84_v49 = vshll.u32 %v231_v48, %v81_v44  ;;  %v87_v51 = vshll.u32 %v232_v50, %v81_v44  ;;  %v90_v54 = vshll.u32 %v233_v53, %v81_v44 }
  0x49   :  { %v93_v56 = vshll.u32 %v234_v55, %v81_v44  ;;  %v96_v58 = vshll.u32 %v235_v57, %v81_v44  ;;  %vm99_vm1 = vcmp.lt.s32.totalorder %v80_v45, 1  ;;  %vm102_vm2 = vcmp.lt.s32.totalorder %v80_v45, 4  ;;  %v202_v44 = vpop.eup %201 }
  0x4a   :  { %v83_v60 = vshrl.u32 %v231_v48, %v82_v47  ;;  %v85_v61 = vshrl.u32 %v232_v50, %v82_v47  ;;  %v88_v62 = vshrl.u32 %v233_v53, %v82_v47  ;;  %v91_v63 = vshrl.u32 %v234_v55, %v82_v47 }
  0x4b   :  { %v94_v0 = vshrl.u32 %v235_v57, %v82_v47  ;;  %v97_v2 = vshrl.u32 %v236_v1, %v82_v47  ;;  %vm101_vm3 = vcmp.lt.s32.totalorder %v80_v45, 3  ;;  %vm100_vm4 = vcmp.lt.s32.totalorder %v80_v45, 2 }
  0x4c   :  { %v86_v4 = vor.u32 %v85_v61, %v84_v49  ;;  %v89_v5 = vor.u32 %v88_v62, %v87_v51  ;;  %v92_v6 = vor.u32 %v91_v63, %v90_v54  ;;  %v57_v49 = vmul.f32 0.6931472, %v202_v44 }
  0x4d   :  { %v95_v7 = vor.u32 %v94_v0, %v93_v56  ;;  %v98_v8 = vor.u32 %v97_v2, %v96_v58 }
  0x4e   :  { %v103_v9 = vsel %vm99_vm1, %v83_v60, %v86_v4  ;;  %v107_v10 = vsel %vm99_vm1, %v86_v4, %v89_v5  ;;  %v104_v12 = vsel %vm102_vm2, %v92_v6, 2102212464  ;;  %v111_v14 = vsel %vm99_vm1, %v89_v5, %v92_v6 }
  0x4f   :  { %v108_v13 = vsel %vm102_vm2, %v95_v7, 920167782  ;;  %v112_v15 = vsel %vm102_vm2, %v98_v8, 1326507024  ;;  %v105_v16 = vsel %vm101_vm3, %v89_v5, %v104_v12  ;;  %v58_v54 = vmul.f32 -2.0, %v57_v49 }
  0x50   :  { %v109_v17 = vsel %vm101_vm3, %v92_v6, %v108_v13  ;;  %v113_v18 = vsel %vm101_vm3, %v95_v7, %v112_v15  ;;  %v106_v19 = vsel %vm100_vm4, %v103_v9, %v105_v16 }
  0x51   :  { %v110_v20 = vsel %vm100_vm4, %v107_v10, %v109_v17  ;;  %v114_v21 = vsel %vm100_vm4, %v111_v14, %v113_v18  ;;  %v122_v27 = vmul.u32 %v115_v11, %v106_v19  ;;  %203 = vrsqrt.f32 %v58_v54 }
  0x52   :  { %v257_v22 = vmul.u32.u64.low %v115_v11, %v114_v21  ;;  %v258_v23 = vmul.u32.u64.high %v115_v11, %v114_v21, %v257_v22  ;;  %v260_v24 = vmul.u32.u64.low %v115_v11, %v110_v20  ;;  %v261_v25 = vmul.u32.u64.high %v115_v11, %v110_v20, %v260_v24 }
  0x53   :  { %vm61_vm9 = vcmp.eq.f32.partialorder %v58_v54, inf  ;;  %v64_v5 = vand.u32 2147483648, %v58_v54  ;;  %vm63_vm11 = vcmp.eq.f32.partialorder %v58_v54, 0.0 }
  0x54   :  { %vm124_vm5 = vc.u32 %v258_v23, %v260_v24  ;;  %v125_v28 = vadd.s32 1, %v261_v25  ;;  %v123_v43 = vadd.s32 %v260_v24, %v258_v23 }
  0x56   :  { %v126_v30 = vsel %vm124_vm5, %v125_v28, %v261_v25 }
  0x57   :  { %v127_v31 = vadd.s32 %v126_v30, %v122_v27 }
  0x59   :  { %v128_v34 = vadd.s32 536870912, %v127_v31 }
  0x5b   :  { %v129_v35 = vshrl.u32 %v128_v34, 30 }
  0x5d   :  { %v130_v36 = vshll.u32 %v129_v35, 30  ;;  %v153_v61 = vsub.s32 4, %v129_v35 }
  0x5e   :  { %v204_v1 = vpop.eup %203 }
  0x5f   :  { %v131_v37 = vsub.s32 %v127_v31, %v130_v36  ;;  %v154_v63 = vsel %vm69_vm7, %v153_v61, %v129_v35  ;;  %v60_v3 = vmul.f32 %v204_v1, %v58_v54 }
  0x60   :  { %v156_v0 = vsel %vm68_vm8, 0, %v154_v63 }
  0x61   :  { %v133_v39 = vsub.s32 0, %v131_v37  ;;  %v160_v2 = vand.u32 3, %v156_v0  ;;  %v62_v7 = vsel %vm61_vm9, %v58_v54, %v60_v3 }
  0x62   :  { %v65_v10 = vsel %vm63_vm11, %v64_v5, %v62_v7 }
  0x63   :  { %v187_v40 = vmin.u32 %v133_v39, %v131_v37  ;;  %vm165_vm10 = vcmp.eq.s32.totalorder %v160_v2, 2  ;;  %vm162_vm12 = vcmp.eq.s32.totalorder %v160_v2, 0  ;;  %vm161_vm13 = vcmp.lt.s32.totalorder %v160_v2, 2 }
  0x65   :  { %v135_v41 = vclz %v187_v40 }
  0x67   :  { %v188_v42 = vadd.s32 4294967294, %v135_v41 }
  0x69   :  { %vm189_vm6 = vcmp.lt.s32.totalorder %v188_v42, 0 }
  0x6a   :  { %v138_v45 = vsel %vm189_vm6, 0, %v188_v42 }
  0x6b   :  { %v139_v46 = vsub.s32 32, %v138_v45  ;;  %v140_v47 = vshll.u32 %v131_v37, %v138_v45  ;;  %v143_v48 = vsub.s32 4294967266, %v138_v45 }
  0x6d   :  { %v141_v50 = vshrl.u32 %v123_v43, %v139_v46  ;;  %v144_v51 = vadd.s32 127, %v143_v48 }
  0x6f   :  { %v142_v52 = vor.u32 %v141_v50, %v140_v47  ;;  %v145_v53 = vshll.u32 %v144_v51, 23 }
  0x71   :  { %v146_v55 = vor.u32 4788187, %v145_v53  ;;  %v149_v56 = vcvt.s32.f32 %v142_v52 }
  0x73   :  { %v147_v57 = vand.u32 2147483647, %v146_v55 }
  0x75   :  { %v150_v58 = vmul.f32 %v149_v56, %v147_v57 }
  0x77   :  { %v151_v59 = vxor.u32 2147483648, %v150_v58 }
  0x79   :  { %v152_v60 = vsel %vm69_vm7, %v151_v59, %v150_v58 }
  0x7a   :  { %v155_v62 = vsel %vm68_vm8, %v251_v33, %v152_v60 }
  0x7b   :  { %205 = vcosq.f32 %v155_v62 }
  0x7c   :  { %207 = vsinq.f32 %v155_v62 }
  0x88   :  { %v206_v4 = vpop.eup %205 }
  0x89   :  { %v208_v6 = vpop.eup %207  ;;  %v166_v38 = vxor.u32 2147483648, %v206_v4 }
  0x8a   :  { %v163_v8 = vxor.u32 2147483648, %v208_v6 }
  0x8b   :  { %v167_v9 = vsel %vm165_vm10, %v166_v38, %v208_v6 }
  0x8c   :  { %v164_v11 = vsel %vm162_vm12, %v206_v4, %v163_v8 }
  0x8d   :  { %v168_v12 = vsel %vm161_vm13, %v164_v11, %v167_v9 }
  0x8e   :  { %v169_v13 = vsel %vm159_vm14, nan, %v168_v12 }
  0x8f   :  { %v170_v14 = vmul.f32 %v169_v13, %v65_v10 }
  0x91   :  { %171 = vst [vmem:[#allocation4] sm:$0xff] %v170_v14 }
  0x92   :  { %220 = shalt.err (!%p217_p4)
}
  0x93   :  { %181 = dma.vmem_to_hbm [thread:$0]  %s179_s9, 128, %s276_s1, [#allocation5]  }
  0x94   :  { %229 = dma.done.wait [#allocation5], 128  }
  0x95   :  { %230 = vsyncadd [#allocation5], 4294967168 }
  0x96   :  { %185 = vsyncpa [#allocation5], 1 }

</bundles_post_ra>
